<compile_context>
chip_gen: v7x
topology: tpu7x:2x2x1
jax: 0.10.0
libtpu: 0.0.40
codegen_flags: <defaults>
</compile_context>

<pallas_src>
import functools

import jax
import jax.numpy as jnp
from jax import lax
from jax.experimental import pallas as pl
from jax.experimental.pallas import tpu as pltpu

_LANE_CHOICES = (1024, 512, 256, 128)


def _round_up(x, m):
    return ((x + m - 1) // m) * m


def _round_down(x, m):
    return (x // m) * m


def _hw_config():
    """Generation-aware defaults: shard count, tile bytes, scoped VMEM."""
    try:
        kind = jax.devices()[0].device_kind.lower()
    except Exception:
        kind = ""
    if "v7" in kind:
        # 2 TensorCores/chip, 64 MiB VMEM, ~3.2 TB/s HBM.
        return dict(num_shards=2, tile_bytes=4 << 20, vmem_limit=48 << 20)
    if "v6" in kind:
        # 1 TC, 128 MiB VMEM, ~1.4 TB/s HBM -> bigger tiles are free.
        return dict(num_shards=1, tile_bytes=8 << 20, vmem_limit=96 << 20)
    if "v5e" in kind or "v5 lite" in kind or "v5lite" in kind:
        # 1 TC, ~0.8 TB/s HBM: 4 MiB tiles already amortize per-step overhead.
        return dict(num_shards=1, tile_bytes=4 << 20, vmem_limit=64 << 20)
    if "v4" in kind or "v5p" in kind:
        # Megacore chips: two TensorCores behind one device -> one shard each.
        return dict(num_shards=2, tile_bytes=4 << 20, vmem_limit=64 << 20)
    return dict(num_shards=1, tile_bytes=4 << 20, vmem_limit=48 << 20)


def _kl_partial_sum_kernel(f_ref, t_ref, o_ref, *, steps, total_rows):
    # f_ref, t_ref: (block_rows, lanes) tiles of the streamed inputs.
    # o_ref: (1, 8, lanes) f32 accumulator, resident across the inner
    # ("arbitrary") grid axis for the current shard.
    block_rows, lanes = f_ref.shape
    s = pl.program_id(0)
    i = pl.program_id(1)

    @pl.when(i == 0)
    def _init():
        o_ref[...] = jnp.zeros_like(o_ref)

    f = f_ref[...].astype(jnp.float32)
    t = t_ref[...].astype(jnp.float32)

    # xlogy(t, t) - t * f; the select forces the t == 0 lanes to exactly 0
    # (log(0) -> -inf/NaN is discarded by the where).  Note: for malformed
    # targets t < 0 PyTorch would propagate NaN, this returns 0.
    pointwise = jnp.where(t > 0.0, t * (jnp.log(t) - f), 0.0)

    def _accumulate(vals):
        # Fold rows in sublane-aligned groups of 8 -> (8, lanes).  Pure VPU
        # adds; the single expensive cross-lane reduce happens in the wrapper.
        part = vals.reshape(block_rows // 8, 8, lanes).sum(axis=0)
        o_ref[...] += part.reshape(1, 8, lanes)

    # Tail handling (no host-side padding): the final real block may be
    # size-clamped by Pallas (rows past the end of the input hold unspecified
    # data), and when the shard count does not divide the block count a
    # trailing block is clamped by the index_map onto the last real block.
    # Both are neutralized by masking on the *intended* row range.
    block_id = s * steps + i
    valid_rows = total_rows - block_id * block_rows

    @pl.when(valid_rows >= block_rows)
    def _full_block():
        _accumulate(pointwise)

    @pl.when(valid_rows < block_rows)
    def _tail_block():
        row_ids = lax.broadcasted_iota(jnp.int32, (block_rows, lanes), 0)
        _accumulate(jnp.where(row_ids < valid_rows, pointwise, 0.0))


def kl_criterion(f, f_hat, *, num_shards=None, max_tile_bytes=None,
                 vmem_limit_bytes=None):
    """KLDivLoss(reduction='batchmean')(f, f_hat) via a Pallas TPU kernel.

    f:     log-probabilities, shape (B, ...) with any trailing dims.
    f_hat: target probabilities, same shape as f.
    Returns a scalar f32.
    """
    assert f.shape == f_hat.shape, (f.shape, f_hat.shape)
    batch = f.shape[0] if f.ndim else 1
    total = int(f.size)

    cfg = _hw_config()
    if num_shards is None:
        num_shards = cfg["num_shards"]
    if max_tile_bytes is None:
        max_tile_bytes = cfg["tile_bytes"]
    if vmem_limit_bytes is None:
        vmem_limit_bytes = cfg["vmem_limit"]

    f_bytes = jnp.dtype(f.dtype).itemsize
    t_bytes = jnp.dtype(f_hat.dtype).itemsize
    # Sub-32-bit dtypes pack along sublanes: keep the row granule at a full
    # packed tile (f32 -> 8 rows, bf16 -> 16, int8/fp8 -> 32).
    granule = max(8, 32 // max(1, min(f_bytes, t_bytes)))

    f1 = f.reshape(-1)
    t1 = f_hat.reshape(-1)

    # Lane-dense 2D view.  Pick the widest lane count that divides the total
    # element count so the reshape is free (no HBM copy).
    lanes = None
    for cand in _LANE_CHOICES:
        if total % cand == 0 and total // cand >= granule:
            lanes = cand
            break
    if lanes is None:
        # Rare fallback (size not a multiple of 128, or tiny input): zero-pad.
        # Padding is inert because t == 0 there -> contribution is 0.
        lanes = _LANE_CHOICES[-1]
        rows = _round_up(max(pl.cdiv(total, lanes), granule), granule)
        pad = rows * lanes - total
        f1 = jnp.pad(f1, (0, pad))
        t1 = jnp.pad(t1, (0, pad))
    else:
        rows = total // lanes

    f2 = f1.reshape(rows, lanes)
    t2 = t1.reshape(rows, lanes)

    # Byte-sized tiles (generation aware); never taller than the
    # granule-aligned row count so only the final block is size-clamped.
    tile_itemsize = max(f_bytes, t_bytes)
    block_rows = max(granule,
                     _round_down(max_tile_bytes // (lanes * tile_itemsize),
                                 granule))
    block_rows = min(block_rows, _round_down(rows, granule))

    nblocks = pl.cdiv(rows, block_rows)
    num_shards = max(1, min(int(num_shards), nblocks))
    steps = pl.cdiv(nblocks, num_shards)
    last_block = nblocks - 1

    def in_index_map(s, i):
        # Clamp so a trailing shard with fewer real blocks never requests an
        # out-of-range block; the kernel masks its contribution to zero.
        return (jnp.minimum(s * steps + i, last_block), 0)

    kernel = functools.partial(_kl_partial_sum_kernel,
                               steps=steps, total_rows=rows)

    cost = pl.CostEstimate(
        flops=6 * total,
        transcendentals=total,
        bytes_accessed=total * (f_bytes + t_bytes) + num_shards * 8 * lanes * 4,
    )

    partials = pl.pallas_call(
        kernel,
        out_shape=jax.ShapeDtypeStruct((num_shards, 8, lanes), jnp.float32),
        grid=(num_shards, steps),
        in_specs=[
            pl.BlockSpec((block_rows, lanes), in_index_map),
            pl.BlockSpec((block_rows, lanes), in_index_map),
        ],
        out_specs=pl.BlockSpec((1, 8, lanes), lambda s, i: (s, 0, 0)),
        compiler_params=pltpu.CompilerParams(
            # TODO(synk): on v7x, if an xprof trace shows only one TensorCore
            # busy, switch the leading axis to pltpu.CORE_PARALLEL (or use
            # pl.core_map) so both TCs actually split the shard axis.
            dimension_semantics=("parallel", "arbitrary"),
            vmem_limit_bytes=vmem_limit_bytes,
        ),
        cost_estimate=cost,
    )(f2, t2)

    # Tiny finalize: one cross-lane reduce + batchmean divide, in plain JAX.
    return jnp.sum(partials) / jnp.float32(batch)


def _reference(f, f_hat):
    # Pure-JAX reference of PyTorch KLDivLoss(reduction='batchmean').
    f32 = f.astype(jnp.float32)
    t32 = f_hat.astype(jnp.float32)
    safe_t = jnp.where(t32 > 0, t32, 1.0)
    pointwise = jnp.where(t32 > 0, t32 * (jnp.log(safe_t) - f32), 0.0)
    return jnp.sum(pointwise) / f.shape[0]


if __name__ == "__main__":
    key = jax.random.PRNGKey(0)

    def make_inputs(k, shape, dtype=jnp.float32):
        k1, k2 = jax.random.split(k)
        lf = jax.random.normal(k1, shape, dtype=jnp.float32)
        lt = jax.random.normal(k2, shape, dtype=jnp.float32)
        return (jax.nn.log_softmax(lf, axis=1).astype(dtype),
                jax.nn.softmax(lt, axis=1).astype(dtype))

    # (shape, dtype, kwargs) -- chosen to exercise every code path at small sizes.
    specs = [
        # NCHW shape the PyTorch module typically sees; single-tile fast path.
        ((2, 4, 16, 16), jnp.float32, {}),
        # Multi-step streamed reduction with a masked tail block
        # (28 rows x 1024 lanes, forced 8-row tiles -> 4 blocks, last has 4
        #  valid rows).
        ((2, 14, 32, 32), jnp.float32, dict(max_tile_bytes=8 * 1024 * 4)),
        # bf16 inputs + 2 shards with an odd block count (the second shard's
        # trailing block is index-clamped and fully masked).
        ((2, 24, 32, 32), jnp.bfloat16, dict(num_shards=2,
                                             max_tile_bytes=16 * 1024 * 2)),
        # Element count not a multiple of 128 -> zero-pad fallback path.
        ((2, 3, 5, 7), jnp.float32, {}),
    ]

    k = key
    for shape, dtype, kwargs in specs:
        k, sub = jax.random.split(k)
        f_in, t_in = make_inputs(sub, shape, dtype)
        got = jax.block_until_ready(kl_criterion(f_in, t_in, **kwargs))
        want = jax.block_until_ready(_reference(f_in, t_in))
        assert jnp.allclose(got, want, rtol=2e-5, atol=1e-5), (shape, got, want)

    print("KERNEL_OK")
</pallas_src>

<mosaic_0001>
module attributes {stable_mosaic.version = 11 : i64} {
  func.func @_kl_partial_sum_kernel(%arg0: i32, %arg1: i32, %arg2: memref<8x256xf32, #tpu.memory_space<vmem>>, %arg3: memref<8x256xf32, #tpu.memory_space<vmem>>, %arg4: memref<1x8x256xf32, #tpu.memory_space<vmem>>) attributes {dimension_semantics = [#tpu.dimension_semantics<parallel>, #tpu.dimension_semantics<arbitrary>], iteration_bounds = array<i64: 1, 1>, scalar_prefetch = 0 : i64, scratch_operands = 0 : i64, tpu.core_type = #tpu.core_type<tc>, window_params = [{transform_indices = @transform_0, window_bounds = array<i64: 8, 256>}, {transform_indices = @transform_1, window_bounds = array<i64: 8, 256>}, {transform_indices = @transform_2, window_bounds = array<i64: 1, 8, 256>}]} {
    %c0_i32 = arith.constant 0 : i32
    %0 = arith.cmpi eq, %arg1, %c0_i32 : i32
    %1 = arith.extui %0 : i1 to i32
    %c0_i32_0 = arith.constant 0 : i32
    %2 = arith.cmpi ne, %1, %c0_i32_0 : i32
    scf.if %2 {
      %cst_10 = arith.constant 0.000000e+00 : f32
      %22 = vector.broadcast %cst_10 : f32 to vector<1x8x256xf32>
      %c0_11 = arith.constant 0 : index
      %c0_12 = arith.constant 0 : index
      %c0_13 = arith.constant 0 : index
      %23 = vector.load %arg4[%c0_11, %c0_12, %c0_13] : memref<1x8x256xf32, #tpu.memory_space<vmem>>, vector<1x8x256xf32>
      tpu.vector_store %arg4[%c0_11, %c0_12, %c0_13], %22 {strides = array<i32>} : memref<1x8x256xf32, #tpu.memory_space<vmem>>, vector<1x8x256xf32>,
    } else {
    }
    %c0 = arith.constant 0 : index
    %c0_1 = arith.constant 0 : index
    %3 = vector.load %arg2[%c0, %c0_1] : memref<8x256xf32, #tpu.memory_space<vmem>>, vector<8x256xf32>
    %c0_2 = arith.constant 0 : index
    %c0_3 = arith.constant 0 : index
    %4 = vector.load %arg3[%c0_2, %c0_3] : memref<8x256xf32, #tpu.memory_space<vmem>>, vector<8x256xf32>
    %cst = arith.constant 0.000000e+00 : f32
    %5 = vector.broadcast %cst : f32 to vector<8x256xf32>
    %6 = arith.cmpf ogt, %4, %5 : vector<8x256xf32>
    %7 = math.log %4 : vector<8x256xf32>
    %8 = arith.subf %7, %3 : vector<8x256xf32>
    %9 = arith.mulf %4, %8 : vector<8x256xf32>
    %cst_4 = arith.constant 0.000000e+00 : f32
    %10 = vector.broadcast %cst_4 : f32 to vector<8x256xf32>
    %11 = arith.select %6, %9, %10 : vector<8x256xi1>, vector<8x256xf32>
    %c1_i32 = arith.constant 1 : i32
    %12 = arith.muli %arg0, %c1_i32 : i32
    %13 = arith.addi %12, %arg1 : i32
    %c8_i32 = arith.constant 8 : i32
    %14 = arith.muli %13, %c8_i32 : i32
    %c8_i32_5 = arith.constant 8 : i32
    %15 = arith.subi %c8_i32_5, %14 : i32
    %c8_i32_6 = arith.constant 8 : i32
    %16 = arith.cmpi sge, %15, %c8_i32_6 : i32
    %17 = arith.extui %16 : i1 to i32
    %c0_i32_7 = arith.constant 0 : i32
    %18 = arith.cmpi ne, %17, %c0_i32_7 : i32
    scf.if %18 {
      %22 = vector.shape_cast %11 : vector<8x256xf32> to vector<1x8x256xf32>
      %cst_10 = arith.constant dense<0.000000e+00> : vector<8x256xf32>
      %23 = vector.multi_reduction <add>, %22, %cst_10 [0] : vector<1x8x256xf32> to vector<8x256xf32>
      %c0_11 = arith.constant 0 : index
      %c0_12 = arith.constant 0 : index
      %c0_13 = arith.constant 0 : index
      %24 = vector.load %arg4[%c0_11, %c0_12, %c0_13] : memref<1x8x256xf32, #tpu.memory_space<vmem>>, vector<1x8x256xf32>
      %25 = vector.shape_cast %23 : vector<8x256xf32> to vector<1x8x256xf32>
      %26 = arith.addf %24, %25 : vector<1x8x256xf32>
      %c0_14 = arith.constant 0 : index
      %c0_15 = arith.constant 0 : index
      %c0_16 = arith.constant 0 : index
      %27 = vector.load %arg4[%c0_14, %c0_15, %c0_16] : memref<1x8x256xf32, #tpu.memory_space<vmem>>, vector<1x8x256xf32>
      tpu.vector_store %arg4[%c0_14, %c0_15, %c0_16], %26 {strides = array<i32>} : memref<1x8x256xf32, #tpu.memory_space<vmem>>, vector<1x8x256xf32>,
    } else {
    }
    %c8_i32_8 = arith.constant 8 : i32
    %19 = arith.cmpi slt, %15, %c8_i32_8 : i32
    %20 = arith.extui %19 : i1 to i32
    %c0_i32_9 = arith.constant 0 : i32
    %21 = arith.cmpi ne, %20, %c0_i32_9 : i32
    scf.if %21 {
      %22 = tpu.iota {dimensions = array<i32: 0>} : vector<8x256xi32>
      %23 = vector.broadcast %15 : i32 to vector<8x256xi32>
      %24 = arith.cmpi slt, %22, %23 : vector<8x256xi32>
      %cst_10 = arith.constant 0.000000e+00 : f32
      %25 = vector.broadcast %cst_10 : f32 to vector<8x256xf32>
      %26 = arith.select %24, %11, %25 : vector<8x256xi1>, vector<8x256xf32>
      %27 = vector.shape_cast %26 : vector<8x256xf32> to vector<1x8x256xf32>
      %cst_11 = arith.constant dense<0.000000e+00> : vector<8x256xf32>
      %28 = vector.multi_reduction <add>, %27, %cst_11 [0] : vector<1x8x256xf32> to vector<8x256xf32>
      %c0_12 = arith.constant 0 : index
      %c0_13 = arith.constant 0 : index
      %c0_14 = arith.constant 0 : index
      %29 = vector.load %arg4[%c0_12, %c0_13, %c0_14] : memref<1x8x256xf32, #tpu.memory_space<vmem>>, vector<1x8x256xf32>
      %30 = vector.shape_cast %28 : vector<8x256xf32> to vector<1x8x256xf32>
      %31 = arith.addf %29, %30 : vector<1x8x256xf32>
      %c0_15 = arith.constant 0 : index
      %c0_16 = arith.constant 0 : index
      %c0_17 = arith.constant 0 : index
      %32 = vector.load %arg4[%c0_15, %c0_16, %c0_17] : memref<1x8x256xf32, #tpu.memory_space<vmem>>, vector<1x8x256xf32>
      tpu.vector_store %arg4[%c0_15, %c0_16, %c0_17], %31 {strides = array<i32>} : memref<1x8x256xf32, #tpu.memory_space<vmem>>, vector<1x8x256xf32>,
    } else {
    }
    return
  }
  func.func @transform_0(%arg0: i32, %arg1: i32) -> (i32, i32) {
    %c1_i32 = arith.constant 1 : i32
    %0 = arith.muli %arg0, %c1_i32 : i32
    %1 = arith.addi %0, %arg1 : i32
    %c0_i32 = arith.constant 0 : i32
    %2 = arith.minsi %1, %c0_i32 : i32
    %c0_i32_0 = arith.constant 0 : i32
    %c0_i32_1 = arith.constant 0 : i32
    return %2, %c0_i32_0 : i32, i32
  }
  func.func @transform_1(%arg0: i32, %arg1: i32) -> (i32, i32) {
    %c1_i32 = arith.constant 1 : i32
    %0 = arith.muli %arg0, %c1_i32 : i32
    %1 = arith.addi %0, %arg1 : i32
    %c0_i32 = arith.constant 0 : i32
    %2 = arith.minsi %1, %c0_i32 : i32
    %c0_i32_0 = arith.constant 0 : i32
    %c0_i32_1 = arith.constant 0 : i32
    return %2, %c0_i32_0 : i32, i32
  }
  func.func @transform_2(%arg0: i32, %arg1: i32) -> (i32, i32, i32) {
    %c0_i32 = arith.constant 0 : i32
    %c0_i32_0 = arith.constant 0 : i32
    %c0_i32_1 = arith.constant 0 : i32
    return %arg0, %c0_i32, %c0_i32_0 : i32, i32, i32
  }
}

</mosaic_0001>

<bundles_post_ra>
// kernel: tpu_custom_call.1
= control target key start
LH: loop header
LB: loop body
LE: loop exit
PB: predicated region body
PF: predicated region fallthrough
CT: control target
= control target key end

     0   :  { %7 = vsyncpa [#allocation3], 0  ;;  %s263_s0 = inlined_call_operand.hbm [shape: f32[8,256], index: 0, kind: input, shape index: {}]   ;;  %s264_s1 = inlined_call_operand.hbm [shape: f32[8,256], index: 1, kind: input, shape index: {}]   ;;  %s265_s2 = inlined_call_operand.hbm [shape: f32[1,8,256], index: 2, kind: output, shape index: {}]  }
   0x1   :  { %8 = vsyncpa [#allocation6], 0 }
   0x2   :  { %9 = vsyncpa [#allocation4], 0  ;;  %s209_s9 = smov [#allocation2]   ;;  %s210_s11 = smov [#allocation5]  }
   0x3   :  { %s22_s10 = sshll.u32 %s209_s9, 4  ;;  %s38_s12 = sshll.u32 %s210_s11, 4  ;;  %s23_s10 = int_to_ptr.vmem [resolvable:$true] %s22_s10  ;;  %s39_s12 = int_to_ptr.vmem [resolvable:$true] %s38_s12 }
   0x4   :  { %s137_s15 = scalar_lea.hbm %s263_s0, 256 }
   0x5   :  { %p138_p0 = scmp.ne.s32.totalorder %s263_s0, %s137_s15  ;;  %p141_p1 = scmp.lt.u32.totalorder %s137_s15, %s263_s0 }
   0x7   :  { %p143_p2 = pnand %p141_p1, %p138_p0 }
   0x9   :  { %146 = shalt.err (!%p143_p2)
}
   0xa   :  { %s147_s20 = scalar_lea.vmem %s23_s10, 256  ;;  %p152_p4 = scmp.lt.s32.totalorder %s23_s10, %s23_s10 }
   0xb   :  { %p148_p3 = scmp.ne.s32.totalorder %s23_s10, %s147_s20  ;;  %p153_p5 = scmp.lt.s32.totalorder %s147_s20, %s147_s20 }
   0xd   :  { %p154_p6 = por %p153_p5, %p152_p4 }
   0xf   :  { %p155_p7 = pnand %p154_p6, %p148_p3 }
  0x11   :  { %158 = shalt.err (!%p155_p7)
}
  0x12   :  { %25 = dma.hbm_to_vmem [thread:$0]  %s263_s0, 256, %s23_s10, [#allocation3]  }
  0x13   :  { %s159_s25 = scalar_lea.hbm %s264_s1, 256 }
  0x14   :  { %p160_p8 = scmp.ne.s32.totalorder %s264_s1, %s159_s25  ;;  %p163_p9 = scmp.lt.u32.totalorder %s159_s25, %s264_s1 }
  0x16   :  { %p165_p10 = pnand %p163_p9, %p160_p8 }
  0x18   :  { %168 = shalt.err (!%p165_p10)
}
  0x19   :  { %s169_s30 = scalar_lea.vmem %s39_s12, 256  ;;  %p174_p12 = scmp.lt.s32.totalorder %s39_s12, %s39_s12 }
  0x1a   :  { %p170_p11 = scmp.ne.s32.totalorder %s39_s12, %s169_s30  ;;  %p175_p13 = scmp.lt.s32.totalorder %s169_s30, %s169_s30 }
  0x1c   :  { %p176_p0 = por %p175_p13, %p174_p12 }
  0x1e   :  { %p177_p1 = pnand %p176_p0, %p170_p11 }
  0x20   :  { %180 = shalt.err (!%p177_p1)
}
  0x21   :  { %41 = dma.hbm_to_vmem [thread:$0]  %s264_s1, 256, %s39_s12, [#allocation6]  }
  0x22   :  { %203 = dma.done.wait [#allocation3], 256  }
  0x23   :  { %204 = vsyncadd [#allocation3], 4294967040 }
  0x24   :  { %205 = dma.done.wait [#allocation6], 256  }
  0x25   :  { %206 = vsyncadd [#allocation6], 4294967040  ;;  %v62_v0 = vld [vmem:[#allocation5] sm:$0xff]  ;;  %v63_v1 = vld [vmem:[#allocation5 + $0x8] sm:$0xff]  ;;  %s211_s1 = smov [#allocation7]  }
  0x26   :  { %133 = vlog2.f32 %v62_v0  ;;  %v60_v3 = vld [vmem:[#allocation2] sm:$0xff]  ;;  %v61_v6 = vld [vmem:[#allocation2 + $0x8] sm:$0xff]  ;;  %vm64_vm0 = vcmp.gt.f32.partialorder %v62_v0, 0.0  ;;  %vm65_vm1 = vcmp.gt.f32.partialorder %v63_v1, 0.0  ;;  %s115_s4 = sshll.u32 %s211_s1, 4  ;;  %s116_s4 = int_to_ptr.vmem [resolvable:$true] %s115_s4 }
  0x27   :  { %135 = vlog2.f32 %v63_v1  ;;  %s181_s5 = scalar_lea.vmem %s116_s4, 256  ;;  %p186_p3 = scmp.lt.s32.totalorder %s116_s4, %s116_s4 }
  0x28   :  { %p182_p2 = scmp.ne.s32.totalorder %s116_s4, %s181_s5  ;;  %p187_p4 = scmp.lt.s32.totalorder %s181_s5, %s181_s5 }
  0x2a   :  { %p188_p5 = por %p187_p4, %p186_p3 }
  0x2c   :  { %p189_p6 = pnand %p188_p5, %p182_p2 }
  0x30   :  { %v134_v2 = vpop.eup %133 }
  0x31   :  { %v136_v4 = vpop.eup %135  ;;  %v67_v5 = vmul.f32 0.6931472, %v134_v2 }
  0x32   :  { %v69_v7 = vmul.f32 0.6931472, %v136_v4 }
  0x33   :  { %v70_v8 = vsub.f32 %v67_v5, %v60_v3 }
  0x34   :  { %v71_v9 = vsub.f32 %v69_v7, %v61_v6 }
  0x35   :  { %v72_v10 = vmul.f32 %v70_v8, %v62_v0 }
  0x36   :  { %v73_v11 = vmul.f32 %v71_v9, %v63_v1 }
  0x37   :  { %v74_v12 = vsel %vm64_vm0, %v72_v10, 0.0 }
  0x38   :  { %v75_v13 = vsel %vm65_vm1, %v73_v11, 0.0  ;;  %89 = vst [vmem:[#allocation7] sm:$0xff] %v74_v12 }
  0x39   :  { %90 = vst [vmem:[#allocation7 + $0x8] sm:$0xff] %v75_v13 }
  0x3a   :  { %192 = shalt.err (!%p189_p6)
}
  0x3b   :  { %s193_s8 = scalar_lea.hbm %s265_s2, 256 }
  0x3c   :  { %p194_p7 = scmp.ne.s32.totalorder %s265_s2, %s193_s8  ;;  %p197_p8 = scmp.lt.u32.totalorder %s193_s8, %s265_s2 }
  0x3e   :  { %p199_p9 = pnand %p197_p8, %p194_p7 }
  0x40   :  { %202 = shalt.err (!%p199_p9)
}
  0x41   :  { %118 = dma.vmem_to_hbm [thread:$0]  %s116_s4, 256, %s265_s2, [#allocation4]  }
  0x42   :  { %207 = dma.done.wait [#allocation4], 256  }
  0x43   :  { %208 = vsyncadd [#allocation4], 4294967040 }
  0x44   :  { %122 = vsyncpa [#allocation3], 1 }
  0x45   :  { %123 = vsyncpa [#allocation6], 1 }
  0x46   :  { %124 = vsyncpa [#allocation4], 1 }

</bundles_post_ra>
